<compile_context>
chip_gen: v7x
topology: tpu7x:2x2x1
jax: 0.10.0
libtpu: 0.0.40
codegen_flags: <defaults>
</compile_context>

<pallas_src>
import functools

import jax
import jax.numpy as jnp
from jax import lax
from jax.experimental import pallas as pl
from jax.experimental.pallas import tpu as pltpu

# ---- module hyper-parameters (small, deterministic) ----
N_HEAD = 2
D_INPUT = 32     # feature dim of k / v inputs
D_OUTPUT = 32    # feature dim of q input (and of the module output)
D_K = 16
D_V = 16
LN_EPS = 1e-6

B = 2
LEN_Q = 8
LEN_K = 8        # len_k == len_v


def _mha_kernel(x_ref, w_ref, ln_ref, out_ref,
                *, b, len_q, len_k, l_pad, n_head, d_k, d_output):
    """Single grid step; all batch elements handled in-kernel.

    x_ref : (B*L, d_output + 2*d_input)  -- lanes [0,d_out)=q (also residual),
                                            [d_out,d_out+d_in)=k, rest=v.
    w_ref : (d_output + 2*d_input, 2*H*d_k + H*d_output) block-diagonal weight:
            lanes [0,H*dk)      = scaled q projection (1/sqrt(d_k) pre-folded),
            lanes [H*dk,2H*dk)  = k projection,
            lanes [2H*dk, end)  = v projection with fc pre-folded per head.
    ln_ref: (2, d_output) -- row 0 gamma, row 1 beta.
    out_ref: (B*len_q, d_output + H*len_k) -- lanes [0,d_out)=module output,
             lanes [d_out + h*len_k, ...) = attention map of head h.
    """
    x = x_ref[...].astype(jnp.float32)
    gamma = ln_ref[0:1, :]                       # (1, d_out)
    beta = ln_ref[1:2, :]                        # (1, d_out)

    # One fused projection matmul (block-diagonal weight, 128 output lanes).
    p = jnp.dot(x, w_ref[...], preferred_element_type=jnp.float32)

    q_off = 0
    k_off = n_head * d_k
    v_off = 2 * n_head * d_k

    # contract last dim of both operands (q . k along d_k) -> no kh.T / XLU transpose
    dn = (((1,), (1,)), ((), ()))

    for bi in range(b):                           # static unroll over batch
        r0 = bi * l_pad
        qs = p[r0:r0 + len_q, q_off:q_off + n_head * d_k]        # (Lq, H*dk), scaled
        ks = p[r0:r0 + len_k, k_off:k_off + n_head * d_k]        # (Lk, H*dk)
        vs = p[r0:r0 + len_k, v_off:v_off + n_head * d_output]   # (Lk, H*d_out), fc folded
        resid = x[r0:r0 + len_q, 0:d_output]                     # (Lq, d_out)

        o_b = jnp.zeros((len_q, d_output), jnp.float32)
        for h in range(n_head):                   # static unroll over heads
            qh = qs[:, h * d_k:(h + 1) * d_k]                    # (Lq, dk)
            kh = ks[:, h * d_k:(h + 1) * d_k]                    # (Lk, dk)
            vh = vs[:, h * d_output:(h + 1) * d_output]          # (Lk, d_out)

            s = lax.dot_general(qh, kh, dimension_numbers=dn,
                                preferred_element_type=jnp.float32)   # (Lq, Lk)
            # numerically-stable softmax, EXACT normalization (attn maps are returned)
            s = s - jnp.max(s, axis=-1, keepdims=True)
            e = jnp.exp(s)
            attn = e / jnp.sum(e, axis=-1, keepdims=True)
            # TODO(synk): attention dropout (nn.Dropout(0.1)) skipped — inference mode.

            # Store this head's attention map directly at its static lane offset
            # (no per-head / per-batch jnp.concatenate relayouts).
            out_ref[bi * len_q:(bi + 1) * len_q,
                    d_output + h * len_k:d_output + (h + 1) * len_k] = (
                        attn.astype(out_ref.dtype))

            # fc already folded into vh -> one matmul per (batch, head), accumulated.
            o_b = o_b + jnp.dot(attn, vh, preferred_element_type=jnp.float32)

        # TODO(synk): output dropout (nn.Dropout(0.1)) skipped — inference mode.
        # residual + LayerNorm over the feature dim, written straight into the slab.
        o = o_b + resid
        mean = jnp.mean(o, axis=-1, keepdims=True)
        var = jnp.mean((o - mean) * (o - mean), axis=-1, keepdims=True)
        normed = (o - mean) * lax.rsqrt(var + LN_EPS)
        out_ref[bi * len_q:(bi + 1) * len_q, 0:d_output] = (
            normed * gamma + beta).astype(out_ref.dtype)


def multi_head_cross_attention(q, k, v, params):
    """q: (B, Lq, d_output), k: (B, Lk, d_input), v: (B, Lv, d_input).
    Returns (out (B, Lq, d_output), attn (B, n_head, Lq, Lk))."""
    b, len_q, d_out = q.shape
    _, len_k, d_in = k.shape
    n_head, d_k, d_v = N_HEAD, D_K, D_V
    l_pad = max(len_q, len_k)

    # ---- host-side (free) layout plumbing ----
    def pad_rows(x, l):
        return x if x.shape[1] == l else jnp.pad(x, ((0, 0), (0, l - x.shape[1]), (0, 0)))

    q_p = pad_rows(q, l_pad).reshape(b * l_pad, d_out)
    k_p = pad_rows(k, l_pad).reshape(b * l_pad, d_in)
    v_p = pad_rows(v, l_pad).reshape(b * l_pad, d_in)
    x_in = jnp.concatenate([q_p, k_p, v_p], axis=-1)        # (B*L, d_out + 2*d_in)

    wq_t = (params["w_qs"] / (d_k ** 0.5)).T                 # (d_out, H*dk), scale folded
    wk_t = params["w_ks"].T                                  # (d_in,  H*dk)
    wv_t = params["w_vs"].T                                  # (d_in,  H*dv)
    fc_t = params["fc"].T                                    # (H*dv,  d_out)
    # Fold fc into the v projection per head (exact algebra); do it at full precision.
    w_vfc = jnp.concatenate(
        [jnp.matmul(wv_t[:, h * d_v:(h + 1) * d_v],
                    fc_t[h * d_v:(h + 1) * d_v, :],
                    precision=jax.lax.Precision.HIGHEST)
         for h in range(n_head)], axis=-1)                   # (d_in, H*d_out)

    in_dim = d_out + 2 * d_in                                # 96
    proj_dim = 2 * n_head * d_k + n_head * d_out             # 128 -> one lane tile
    w_bd = jnp.zeros((in_dim, proj_dim), jnp.float32)
    w_bd = w_bd.at[0:d_out, 0:n_head * d_k].set(wq_t)
    w_bd = w_bd.at[d_out:d_out + d_in, n_head * d_k:2 * n_head * d_k].set(wk_t)
    w_bd = w_bd.at[d_out + d_in:d_out + 2 * d_in, 2 * n_head * d_k:].set(w_vfc)

    ln = jnp.stack([params["ln_gamma"], params["ln_beta"]], axis=0)  # (2, d_out)

    out_lanes = d_out + n_head * len_k                        # merged output slab width

    kernel = functools.partial(_mha_kernel, b=b, len_q=len_q, len_k=len_k,
                               l_pad=l_pad, n_head=n_head, d_k=d_k, d_output=d_out)

    # Single grid step; block shapes equal the full array extents (legal even though
    # they are not (8,128) multiples).  3 input DMAs, 1 output DMA.
    grid_spec = pltpu.PrefetchScalarGridSpec(
        num_scalar_prefetch=0,
        grid=(1,),
        in_specs=[
            pl.BlockSpec((b * l_pad, in_dim), lambda i: (0, 0)),      # fused [q|k|v]
            pl.BlockSpec((in_dim, proj_dim), lambda i: (0, 0)),       # block-diag weight
            pl.BlockSpec((2, d_out), lambda i: (0, 0)),               # gamma / beta
        ],
        out_specs=pl.BlockSpec((b * len_q, out_lanes), lambda i: (0, 0)),
    )

    fused = pl.pallas_call(
        kernel,
        out_shape=jax.ShapeDtypeStruct((b * len_q, out_lanes), jnp.float32),
        grid_spec=grid_spec,
        compiler_params=pltpu.CompilerParams(dimension_semantics=("arbitrary",)),
    )(x_in, w_bd, ln)

    out = fused[:, :d_out].reshape(b, len_q, d_out)
    attn = fused[:, d_out:].reshape(b, len_q, n_head, len_k).transpose(0, 2, 1, 3)
    return out, attn


def _reference(q, k, v, params):
    """Plain-JAX reference mirroring the PyTorch forward (eval mode), computed at
    HIGHEST matmul precision so it is an accurate f32 baseline."""
    n_head, d_k, d_v = N_HEAD, D_K, D_V
    b, len_q, d_out = q.shape
    len_k = k.shape[1]
    hp = jax.lax.Precision.HIGHEST
    residual = q
    qp = jnp.matmul(q, params["w_qs"].T, precision=hp).reshape(
        b, len_q, n_head, d_k).transpose(0, 2, 1, 3)
    kp = jnp.matmul(k, params["w_ks"].T, precision=hp).reshape(
        b, len_k, n_head, d_k).transpose(0, 2, 1, 3)
    vp = jnp.matmul(v, params["w_vs"].T, precision=hp).reshape(
        b, len_k, n_head, d_v).transpose(0, 2, 1, 3)
    attn = jnp.einsum("bhqd,bhkd->bhqk", qp / (d_k ** 0.5), kp, precision=hp)
    attn = jax.nn.softmax(attn, axis=-1)
    o = jnp.einsum("bhqk,bhkd->bhqd", attn, vp, precision=hp)
    o = o.transpose(0, 2, 1, 3).reshape(b, len_q, n_head * d_v)
    o = jnp.matmul(o, params["fc"].T, precision=hp)
    o = o + residual
    mean = jnp.mean(o, axis=-1, keepdims=True)
    var = jnp.mean((o - mean) ** 2, axis=-1, keepdims=True)
    o = (o - mean) / jnp.sqrt(var + LN_EPS)
    o = o * params["ln_gamma"] + params["ln_beta"]
    return o, attn


if __name__ == "__main__":
    key = jax.random.PRNGKey(0)
    k0, k1, k2, k3, k4, k5, k6 = jax.random.split(key, 7)

    # deterministic parameter init (nn.Linear weight layout: (out, in))
    params = {
        "w_qs": jax.random.normal(k0, (N_HEAD * D_K, D_OUTPUT), jnp.float32) * 0.1,
        "w_ks": jax.random.normal(k1, (N_HEAD * D_K, D_INPUT), jnp.float32) * 0.1,
        "w_vs": jax.random.normal(k2, (N_HEAD * D_V, D_INPUT), jnp.float32) * 0.1,
        "fc": jax.random.normal(k3, (D_OUTPUT, N_HEAD * D_V), jnp.float32) * 0.1,
        "ln_gamma": jnp.ones((D_OUTPUT,), jnp.float32),
        "ln_beta": jnp.zeros((D_OUTPUT,), jnp.float32),
    }

    q_in = jax.random.normal(k4, (B, LEN_Q, D_OUTPUT), jnp.float32)
    k_in = jax.random.normal(k5, (B, LEN_K, D_INPUT), jnp.float32)
    v_in = jax.random.normal(k6, (B, LEN_K, D_INPUT), jnp.float32)

    out, attn = multi_head_cross_attention(q_in, k_in, v_in, params)
    out = jax.block_until_ready(out)
    attn = jax.block_until_ready(attn)

    ref_out, ref_attn = _reference(q_in, k_in, v_in, params)
    # The kernel uses an exact softmax divide (no approx reciprocal).  The tolerance
    # below only budgets for the TPU MXU's default (bf16-pass) handling of f32
    # matmuls inside the kernel vs. the HIGHEST-precision XLA reference — it is a
    # hardware-precision bound, not an algorithmic approximation.
    assert jnp.allclose(out, ref_out, atol=1e-2, rtol=1e-2), "output mismatch"
    assert jnp.allclose(attn, ref_attn, atol=5e-3, rtol=5e-3), "attn mismatch"

    print("KERNEL_OK")
</pallas_src>

<mosaic_0001>
module attributes {stable_mosaic.version = 11 : i64} {
  func.func @_mha_kernel(%arg0: i32, %arg1: memref<16x96xf32, #tpu.memory_space<vmem>>, %arg2: memref<96x128xf32, #tpu.memory_space<vmem>>, %arg3: memref<2x32xf32, #tpu.memory_space<vmem>>, %arg4: memref<16x48xf32, #tpu.memory_space<vmem>>) attributes {dimension_semantics = [#tpu.dimension_semantics<arbitrary>], iteration_bounds = array<i64: 1>, scalar_prefetch = 0 : i64, scratch_operands = 0 : i64, tpu.core_type = #tpu.core_type<tc>, window_params = [{pipeline_mode = #tpu.pipeline_mode<synchronous>, transform_indices = @transform_0, window_bounds = array<i64: 16, 96>}, {pipeline_mode = #tpu.pipeline_mode<synchronous>, transform_indices = @transform_1, window_bounds = array<i64: 96, 128>}, {pipeline_mode = #tpu.pipeline_mode<synchronous>, transform_indices = @transform_2, window_bounds = array<i64: 2, 32>}, {pipeline_mode = #tpu.pipeline_mode<synchronous>, transform_indices = @transform_3, window_bounds = array<i64: 16, 48>}]} {
    %c0 = arith.constant 0 : index
    %c0_0 = arith.constant 0 : index
    %0 = vector.load %arg1[%c0, %c0_0] : memref<16x96xf32, #tpu.memory_space<vmem>>, vector<16x96xf32>
    %c0_1 = arith.constant 0 : index
    %c0_2 = arith.constant 0 : index
    %1 = vector.load %arg3[%c0_1, %c0_2] : memref<2x32xf32, #tpu.memory_space<vmem>>, vector<1x32xf32>
    %c1 = arith.constant 1 : index
    %c0_3 = arith.constant 0 : index
    %2 = vector.load %arg3[%c1, %c0_3] : memref<2x32xf32, #tpu.memory_space<vmem>>, vector<1x32xf32>
    %c0_4 = arith.constant 0 : index
    %c0_5 = arith.constant 0 : index
    %3 = vector.load %arg2[%c0_4, %c0_5] : memref<96x128xf32, #tpu.memory_space<vmem>>, vector<96x128xf32>
    %cst = arith.constant dense<0.000000e+00> : vector<16x128xf32>
    %4 = tpu.matmul %0, %3, %cst {dimension_numbers = #tpu.dot_dimension_numbers<[1], [0], [0], [1], [0, 0, 1, 1], [], []>} : vector<16x96xf32>, vector<96x128xf32>, vector<16x128xf32> -> vector<16x128xf32>
    %5 = vector.extract_strided_slice %4 {offsets = [0, 0], sizes = [8, 32], strides = [1, 1]} : vector<16x128xf32> to vector<8x32xf32>
    %6 = vector.extract_strided_slice %4 {offsets = [0, 32], sizes = [8, 32], strides = [1, 1]} : vector<16x128xf32> to vector<8x32xf32>
    %7 = vector.extract_strided_slice %4 {offsets = [0, 64], sizes = [8, 64], strides = [1, 1]} : vector<16x128xf32> to vector<8x64xf32>
    %8 = vector.extract_strided_slice %0 {offsets = [0, 0], sizes = [8, 32], strides = [1, 1]} : vector<16x96xf32> to vector<8x32xf32>
    %cst_6 = arith.constant 0.000000e+00 : f32
    %9 = vector.broadcast %cst_6 : f32 to vector<8x32xf32>
    %10 = vector.extract_strided_slice %5 {offsets = [0, 0], sizes = [8, 16], strides = [1, 1]} : vector<8x32xf32> to vector<8x16xf32>
    %11 = vector.extract_strided_slice %6 {offsets = [0, 0], sizes = [8, 16], strides = [1, 1]} : vector<8x32xf32> to vector<8x16xf32>
    %12 = vector.extract_strided_slice %7 {offsets = [0, 0], sizes = [8, 32], strides = [1, 1]} : vector<8x64xf32> to vector<8x32xf32>
    %cst_7 = arith.constant dense<0.000000e+00> : vector<8x8xf32>
    %13 = tpu.matmul %10, %11, %cst_7 {dimension_numbers = #tpu.dot_dimension_numbers<[1], [1], [0], [0], [0, 0, 1, 0], [], []>} : vector<8x16xf32>, vector<8x16xf32>, vector<8x8xf32> -> vector<8x8xf32>
    %cst_8 = arith.constant dense<0xFF800000> : vector<8xf32>
    %14 = vector.multi_reduction <maximumf>, %13, %cst_8 [1] : vector<8x8xf32> to vector<8xf32>
    %15 = vector.shape_cast %14 : vector<8xf32> to vector<8x1xf32>
    %16 = vector.broadcast %15 : vector<8x1xf32> to vector<8x8xf32>
    %17 = arith.subf %13, %16 : vector<8x8xf32>
    %18 = math.exp %17 : vector<8x8xf32>
    %cst_9 = arith.constant dense<0.000000e+00> : vector<8xf32>
    %19 = vector.multi_reduction <add>, %18, %cst_9 [1] : vector<8x8xf32> to vector<8xf32>
    %20 = vector.shape_cast %19 : vector<8xf32> to vector<8x1xf32>
    %21 = vector.broadcast %20 : vector<8x1xf32> to vector<8x8xf32>
    %22 = arith.divf %18, %21 : vector<8x8xf32>
    %c0_10 = arith.constant 0 : index
    %c32 = arith.constant 32 : index
    %23 = vector.load %arg4[%c0_10, %c32] : memref<16x48xf32, #tpu.memory_space<vmem>>, vector<8x8xf32>
    tpu.vector_store %arg4[%c0_10, %c32], %22 {strides = array<i32>} : memref<16x48xf32, #tpu.memory_space<vmem>>, vector<8x8xf32>,
    %cst_11 = arith.constant dense<0.000000e+00> : vector<8x32xf32>
    %24 = tpu.matmul %22, %12, %cst_11 {dimension_numbers = #tpu.dot_dimension_numbers<[1], [0], [0], [1], [0, 0, 1, 1], [], []>} : vector<8x8xf32>, vector<8x32xf32>, vector<8x32xf32> -> vector<8x32xf32>
    %25 = arith.addf %9, %24 : vector<8x32xf32>
    %26 = vector.extract_strided_slice %5 {offsets = [0, 16], sizes = [8, 16], strides = [1, 1]} : vector<8x32xf32> to vector<8x16xf32>
    %27 = vector.extract_strided_slice %6 {offsets = [0, 16], sizes = [8, 16], strides = [1, 1]} : vector<8x32xf32> to vector<8x16xf32>
    %28 = vector.extract_strided_slice %7 {offsets = [0, 32], sizes = [8, 32], strides = [1, 1]} : vector<8x64xf32> to vector<8x32xf32>
    %cst_12 = arith.constant dense<0.000000e+00> : vector<8x8xf32>
    %29 = tpu.matmul %26, %27, %cst_12 {dimension_numbers = #tpu.dot_dimension_numbers<[1], [1], [0], [0], [0, 0, 1, 0], [], []>} : vector<8x16xf32>, vector<8x16xf32>, vector<8x8xf32> -> vector<8x8xf32>
    %cst_13 = arith.constant dense<0xFF800000> : vector<8xf32>
    %30 = vector.multi_reduction <maximumf>, %29, %cst_13 [1] : vector<8x8xf32> to vector<8xf32>
    %31 = vector.shape_cast %30 : vector<8xf32> to vector<8x1xf32>
    %32 = vector.broadcast %31 : vector<8x1xf32> to vector<8x8xf32>
    %33 = arith.subf %29, %32 : vector<8x8xf32>
    %34 = math.exp %33 : vector<8x8xf32>
    %cst_14 = arith.constant dense<0.000000e+00> : vector<8xf32>
    %35 = vector.multi_reduction <add>, %34, %cst_14 [1] : vector<8x8xf32> to vector<8xf32>
    %36 = vector.shape_cast %35 : vector<8xf32> to vector<8x1xf32>
    %37 = vector.broadcast %36 : vector<8x1xf32> to vector<8x8xf32>
    %38 = arith.divf %34, %37 : vector<8x8xf32>
    %c0_15 = arith.constant 0 : index
    %c40 = arith.constant 40 : index
    %39 = vector.load %arg4[%c0_15, %c40] : memref<16x48xf32, #tpu.memory_space<vmem>>, vector<8x8xf32>
    tpu.vector_store %arg4[%c0_15, %c40], %38 {strides = array<i32>} : memref<16x48xf32, #tpu.memory_space<vmem>>, vector<8x8xf32>,
    %cst_16 = arith.constant dense<0.000000e+00> : vector<8x32xf32>
    %40 = tpu.matmul %38, %28, %cst_16 {dimension_numbers = #tpu.dot_dimension_numbers<[1], [0], [0], [1], [0, 0, 1, 1], [], []>} : vector<8x8xf32>, vector<8x32xf32>, vector<8x32xf32> -> vector<8x32xf32>
    %41 = arith.addf %25, %40 : vector<8x32xf32>
    %42 = arith.addf %41, %8 : vector<8x32xf32>
    %cst_17 = arith.constant dense<0.000000e+00> : vector<8xf32>
    %43 = vector.multi_reduction <add>, %42, %cst_17 [1] : vector<8x32xf32> to vector<8xf32>
    %44 = vector.shape_cast %43 : vector<8xf32> to vector<8x1xf32>
    %cst_18 = arith.constant 3.200000e+01 : f32
    %45 = vector.broadcast %cst_18 : f32 to vector<8x1xf32>
    %46 = arith.divf %44, %45 : vector<8x1xf32>
    %47 = vector.broadcast %46 : vector<8x1xf32> to vector<8x32xf32>
    %48 = arith.subf %42, %47 : vector<8x32xf32>
    %49 = vector.broadcast %46 : vector<8x1xf32> to vector<8x32xf32>
    %50 = arith.subf %42, %49 : vector<8x32xf32>
    %51 = arith.mulf %48, %50 : vector<8x32xf32>
    %cst_19 = arith.constant dense<0.000000e+00> : vector<8xf32>
    %52 = vector.multi_reduction <add>, %51, %cst_19 [1] : vector<8x32xf32> to vector<8xf32>
    %53 = vector.shape_cast %52 : vector<8xf32> to vector<8x1xf32>
    %cst_20 = arith.constant 3.200000e+01 : f32
    %54 = vector.broadcast %cst_20 : f32 to vector<8x1xf32>
    %55 = arith.divf %53, %54 : vector<8x1xf32>
    %56 = vector.broadcast %46 : vector<8x1xf32> to vector<8x32xf32>
    %57 = arith.subf %42, %56 : vector<8x32xf32>
    %cst_21 = arith.constant 9.99999997E-7 : f32
    %58 = vector.broadcast %cst_21 : f32 to vector<8x1xf32>
    %59 = arith.addf %55, %58 : vector<8x1xf32>
    %60 = math.rsqrt %59 : vector<8x1xf32>
    %61 = vector.broadcast %60 : vector<8x1xf32> to vector<8x32xf32>
    %62 = arith.mulf %57, %61 : vector<8x32xf32>
    %63 = vector.broadcast %1 : vector<1x32xf32> to vector<8x32xf32>
    %64 = arith.mulf %62, %63 : vector<8x32xf32>
    %65 = vector.broadcast %2 : vector<1x32xf32> to vector<8x32xf32>
    %66 = arith.addf %64, %65 : vector<8x32xf32>
    %c0_22 = arith.constant 0 : index
    %c0_23 = arith.constant 0 : index
    %67 = vector.load %arg4[%c0_22, %c0_23] : memref<16x48xf32, #tpu.memory_space<vmem>>, vector<8x32xf32>
    tpu.vector_store %arg4[%c0_22, %c0_23], %66 {strides = array<i32>} : memref<16x48xf32, #tpu.memory_space<vmem>>, vector<8x32xf32>,
    %68 = vector.extract_strided_slice %4 {offsets = [8, 0], sizes = [8, 32], strides = [1, 1]} : vector<16x128xf32> to vector<8x32xf32>
    %69 = vector.extract_strided_slice %4 {offsets = [8, 32], sizes = [8, 32], strides = [1, 1]} : vector<16x128xf32> to vector<8x32xf32>
    %70 = vector.extract_strided_slice %4 {offsets = [8, 64], sizes = [8, 64], strides = [1, 1]} : vector<16x128xf32> to vector<8x64xf32>
    %71 = vector.extract_strided_slice %0 {offsets = [8, 0], sizes = [8, 32], strides = [1, 1]} : vector<16x96xf32> to vector<8x32xf32>
    %cst_24 = arith.constant 0.000000e+00 : f32
    %72 = vector.broadcast %cst_24 : f32 to vector<8x32xf32>
    %73 = vector.extract_strided_slice %68 {offsets = [0, 0], sizes = [8, 16], strides = [1, 1]} : vector<8x32xf32> to vector<8x16xf32>
    %74 = vector.extract_strided_slice %69 {offsets = [0, 0], sizes = [8, 16], strides = [1, 1]} : vector<8x32xf32> to vector<8x16xf32>
    %75 = vector.extract_strided_slice %70 {offsets = [0, 0], sizes = [8, 32], strides = [1, 1]} : vector<8x64xf32> to vector<8x32xf32>
    %cst_25 = arith.constant dense<0.000000e+00> : vector<8x8xf32>
    %76 = tpu.matmul %73, %74, %cst_25 {dimension_numbers = #tpu.dot_dimension_numbers<[1], [1], [0], [0], [0, 0, 1, 0], [], []>} : vector<8x16xf32>, vector<8x16xf32>, vector<8x8xf32> -> vector<8x8xf32>
    %cst_26 = arith.constant dense<0xFF800000> : vector<8xf32>
    %77 = vector.multi_reduction <maximumf>, %76, %cst_26 [1] : vector<8x8xf32> to vector<8xf32>
    %78 = vector.shape_cast %77 : vector<8xf32> to vector<8x1xf32>
    %79 = vector.broadcast %78 : vector<8x1xf32> to vector<8x8xf32>
    %80 = arith.subf %76, %79 : vector<8x8xf32>
    %81 = math.exp %80 : vector<8x8xf32>
    %cst_27 = arith.constant dense<0.000000e+00> : vector<8xf32>
    %82 = vector.multi_reduction <add>, %81, %cst_27 [1] : vector<8x8xf32> to vector<8xf32>
    %83 = vector.shape_cast %82 : vector<8xf32> to vector<8x1xf32>
    %84 = vector.broadcast %83 : vector<8x1xf32> to vector<8x8xf32>
    %85 = arith.divf %81, %84 : vector<8x8xf32>
    %c8 = arith.constant 8 : index
    %c32_28 = arith.constant 32 : index
    %86 = vector.load %arg4[%c8, %c32_28] : memref<16x48xf32, #tpu.memory_space<vmem>>, vector<8x8xf32>
    tpu.vector_store %arg4[%c8, %c32_28], %85 {strides = array<i32>} : memref<16x48xf32, #tpu.memory_space<vmem>>, vector<8x8xf32>,
    %cst_29 = arith.constant dense<0.000000e+00> : vector<8x32xf32>
    %87 = tpu.matmul %85, %75, %cst_29 {dimension_numbers = #tpu.dot_dimension_numbers<[1], [0], [0], [1], [0, 0, 1, 1], [], []>} : vector<8x8xf32>, vector<8x32xf32>, vector<8x32xf32> -> vector<8x32xf32>
    %88 = arith.addf %72, %87 : vector<8x32xf32>
    %89 = vector.extract_strided_slice %68 {offsets = [0, 16], sizes = [8, 16], strides = [1, 1]} : vector<8x32xf32> to vector<8x16xf32>
    %90 = vector.extract_strided_slice %69 {offsets = [0, 16], sizes = [8, 16], strides = [1, 1]} : vector<8x32xf32> to vector<8x16xf32>
    %91 = vector.extract_strided_slice %70 {offsets = [0, 32], sizes = [8, 32], strides = [1, 1]} : vector<8x64xf32> to vector<8x32xf32>
    %cst_30 = arith.constant dense<0.000000e+00> : vector<8x8xf32>
    %92 = tpu.matmul %89, %90, %cst_30 {dimension_numbers = #tpu.dot_dimension_numbers<[1], [1], [0], [0], [0, 0, 1, 0], [], []>} : vector<8x16xf32>, vector<8x16xf32>, vector<8x8xf32> -> vector<8x8xf32>
    %cst_31 = arith.constant dense<0xFF800000> : vector<8xf32>
    %93 = vector.multi_reduction <maximumf>, %92, %cst_31 [1] : vector<8x8xf32> to vector<8xf32>
    %94 = vector.shape_cast %93 : vector<8xf32> to vector<8x1xf32>
    %95 = vector.broadcast %94 : vector<8x1xf32> to vector<8x8xf32>
    %96 = arith.subf %92, %95 : vector<8x8xf32>
    %97 = math.exp %96 : vector<8x8xf32>
    %cst_32 = arith.constant dense<0.000000e+00> : vector<8xf32>
    %98 = vector.multi_reduction <add>, %97, %cst_32 [1] : vector<8x8xf32> to vector<8xf32>
    %99 = vector.shape_cast %98 : vector<8xf32> to vector<8x1xf32>
    %100 = vector.broadcast %99 : vector<8x1xf32> to vector<8x8xf32>
    %101 = arith.divf %97, %100 : vector<8x8xf32>
    %c8_33 = arith.constant 8 : index
    %c40_34 = arith.constant 40 : index
    %102 = vector.load %arg4[%c8_33, %c40_34] : memref<16x48xf32, #tpu.memory_space<vmem>>, vector<8x8xf32>
    tpu.vector_store %arg4[%c8_33, %c40_34], %101 {strides = array<i32>} : memref<16x48xf32, #tpu.memory_space<vmem>>, vector<8x8xf32>,
    %cst_35 = arith.constant dense<0.000000e+00> : vector<8x32xf32>
    %103 = tpu.matmul %101, %91, %cst_35 {dimension_numbers = #tpu.dot_dimension_numbers<[1], [0], [0], [1], [0, 0, 1, 1], [], []>} : vector<8x8xf32>, vector<8x32xf32>, vector<8x32xf32> -> vector<8x32xf32>
    %104 = arith.addf %88, %103 : vector<8x32xf32>
    %105 = arith.addf %104, %71 : vector<8x32xf32>
    %cst_36 = arith.constant dense<0.000000e+00> : vector<8xf32>
    %106 = vector.multi_reduction <add>, %105, %cst_36 [1] : vector<8x32xf32> to vector<8xf32>
    %107 = vector.shape_cast %106 : vector<8xf32> to vector<8x1xf32>
    %cst_37 = arith.constant 3.200000e+01 : f32
    %108 = vector.broadcast %cst_37 : f32 to vector<8x1xf32>
    %109 = arith.divf %107, %108 : vector<8x1xf32>
    %110 = vector.broadcast %109 : vector<8x1xf32> to vector<8x32xf32>
    %111 = arith.subf %105, %110 : vector<8x32xf32>
    %112 = vector.broadcast %109 : vector<8x1xf32> to vector<8x32xf32>
    %113 = arith.subf %105, %112 : vector<8x32xf32>
    %114 = arith.mulf %111, %113 : vector<8x32xf32>
    %cst_38 = arith.constant dense<0.000000e+00> : vector<8xf32>
    %115 = vector.multi_reduction <add>, %114, %cst_38 [1] : vector<8x32xf32> to vector<8xf32>
    %116 = vector.shape_cast %115 : vector<8xf32> to vector<8x1xf32>
    %cst_39 = arith.constant 3.200000e+01 : f32
    %117 = vector.broadcast %cst_39 : f32 to vector<8x1xf32>
    %118 = arith.divf %116, %117 : vector<8x1xf32>
    %119 = vector.broadcast %109 : vector<8x1xf32> to vector<8x32xf32>
    %120 = arith.subf %105, %119 : vector<8x32xf32>
    %cst_40 = arith.constant 9.99999997E-7 : f32
    %121 = vector.broadcast %cst_40 : f32 to vector<8x1xf32>
    %122 = arith.addf %118, %121 : vector<8x1xf32>
    %123 = math.rsqrt %122 : vector<8x1xf32>
    %124 = vector.broadcast %123 : vector<8x1xf32> to vector<8x32xf32>
    %125 = arith.mulf %120, %124 : vector<8x32xf32>
    %126 = vector.broadcast %1 : vector<1x32xf32> to vector<8x32xf32>
    %127 = arith.mulf %125, %126 : vector<8x32xf32>
    %128 = vector.broadcast %2 : vector<1x32xf32> to vector<8x32xf32>
    %129 = arith.addf %127, %128 : vector<8x32xf32>
    %c8_41 = arith.constant 8 : index
    %c0_42 = arith.constant 0 : index
    %130 = vector.load %arg4[%c8_41, %c0_42] : memref<16x48xf32, #tpu.memory_space<vmem>>, vector<8x32xf32>
    tpu.vector_store %arg4[%c8_41, %c0_42], %129 {strides = array<i32>} : memref<16x48xf32, #tpu.memory_space<vmem>>, vector<8x32xf32>,
    return
  }
  func.func @transform_0(%arg0: i32) -> (i32, i32) {
    %c0_i32 = arith.constant 0 : i32
    %c0_i32_0 = arith.constant 0 : i32
    %c0_i32_1 = arith.constant 0 : i32
    return %c0_i32, %c0_i32_0 : i32, i32
  }
  func.func @transform_1(%arg0: i32) -> (i32, i32) {
    %c0_i32 = arith.constant 0 : i32
    %c0_i32_0 = arith.constant 0 : i32
    %c0_i32_1 = arith.constant 0 : i32
    return %c0_i32, %c0_i32_0 : i32, i32
  }
  func.func @transform_2(%arg0: i32) -> (i32, i32) {
    %c0_i32 = arith.constant 0 : i32
    %c0_i32_0 = arith.constant 0 : i32
    %c0_i32_1 = arith.constant 0 : i32
    return %c0_i32, %c0_i32_0 : i32, i32
  }
  func.func @transform_3(%arg0: i32) -> (i32, i32) {
    %c0_i32 = arith.constant 0 : i32
    %c0_i32_0 = arith.constant 0 : i32
    %c0_i32_1 = arith.constant 0 : i32
    return %c0_i32, %c0_i32_0 : i32, i32
  }
}

</mosaic_0001>

<bundles_post_ra>
// kernel: tpu_custom_call.1
= control target key start
LH: loop header
LB: loop body
LE: loop exit
PB: predicated region body
PF: predicated region fallthrough
CT: control target
= control target key end

     0   :  { %8 = vsyncpa [#allocation3], 0  ;;  %s1293_s0 = inlined_call_operand.hbm [shape: f32[16,96], index: 0, kind: input, shape index: {}]   ;;  %s1294_s1 = inlined_call_operand.hbm [shape: f32[96,128], index: 1, kind: input, shape index: {}]   ;;  %s1295_s2 = inlined_call_operand.vmem [shape: f32[2,32], index: 2, kind: input, shape index: {}]   ;;  %s1296_s3 = inlined_call_operand.hbm [shape: f32[16,48], index: 3, kind: output, shape index: {}]  }
   0x1   :  { %9 = vsyncpa [#allocation6], 0 }
   0x2   :  { %10 = vsyncpa [#allocation4], 0  ;;  %s1123_s12 = smov [#allocation2]   ;;  %s1051_s16 = scalar_lea.hbm %s1293_s0, 256 }
   0x3   :  { %s16_s13 = sshll.u32 %s1123_s12, 4  ;;  %p1052_p0 = scmp.ne.s32.totalorder %s1293_s0, %s1051_s16  ;;  %s17_s13 = int_to_ptr.vmem [resolvable:$true] %s16_s13 }
   0x4   :  { %p1055_p1 = scmp.lt.u32.totalorder %s1051_s16, %s1293_s0 }
   0x6   :  { %p1057_p2 = pnand %p1055_p1, %p1052_p0 }
   0x8   :  { %1060 = shalt.err (!%p1057_p2)
}
   0x9   :  { %s1061_s21 = scalar_lea.vmem %s17_s13, 256  ;;  %p1066_p4 = scmp.lt.s32.totalorder %s17_s13, %s17_s13 }
   0xa   :  { %p1062_p3 = scmp.ne.s32.totalorder %s17_s13, %s1061_s21  ;;  %p1067_p5 = scmp.lt.s32.totalorder %s1061_s21, %s1061_s21 }
   0xc   :  { %p1068_p6 = por %p1067_p5, %p1066_p4 }
   0xe   :  { %p1069_p7 = pnand %p1068_p6, %p1062_p3 }
  0x10   :  { %1072 = shalt.err (!%p1069_p7)
}
  0x11   :  { %s1124_s22 = smov 128   ;;  %s1125_s23 = smov 8  }
  0x12   :  { %22 = dma.hbm_to_vmem [thread:$0]  %s1293_s0, 256, %s17_s13, [#allocation3], %s1124_s22, %s1124_s22, %s1125_s23  }
  0x13   :  { %s1126_s26 = smov [#allocation5]   ;;  %s1073_s30 = scalar_lea.hbm %s1294_s1, 1536 }
  0x14   :  { %s28_s27 = sshll.u32 %s1126_s26, 4  ;;  %p1074_p8 = scmp.ne.s32.totalorder %s1294_s1, %s1073_s30  ;;  %s29_s27 = int_to_ptr.vmem [resolvable:$true] %s28_s27 }
  0x15   :  { %p1077_p9 = scmp.lt.u32.totalorder %s1073_s30, %s1294_s1 }
  0x17   :  { %p1079_p10 = pnand %p1077_p9, %p1074_p8 }
  0x19   :  { %1082 = shalt.err (!%p1079_p10)
}
  0x1a   :  { %s1083_s8 = scalar_lea.vmem %s29_s27, 1536  ;;  %p1088_p12 = scmp.lt.s32.totalorder %s29_s27, %s29_s27 }
  0x1b   :  { %p1084_p11 = scmp.ne.s32.totalorder %s29_s27, %s1083_s8  ;;  %p1089_p13 = scmp.lt.s32.totalorder %s1083_s8, %s1083_s8 }
  0x1d   :  { %p1090_p0 = por %p1089_p13, %p1088_p12 }
  0x1f   :  { %p1091_p1 = pnand %p1090_p0, %p1084_p11 }
  0x21   :  { %1094 = shalt.err (!%p1091_p1)
}
  0x22   :  { %34 = dma.hbm_to_vmem [thread:$0]  %s1294_s1, 1536, %s29_s27, [#allocation6], %s1124_s22, %s1124_s22, %s1125_s23  }
  0x23   :  { %1117 = dma.done.wait [#allocation3], 256  }
  0x24   :  { %1118 = vsyncadd [#allocation3], 4294967040 }
  0x25   :  { %1119 = dma.done.wait [#allocation6], 1536  }
  0x26   :  { %1120 = vsyncadd [#allocation6], 4294965760  ;;  %v47_v0 = vld [vmem:[#allocation5] sm:$0xff]  ;;  %v48_v1 = vld [vmem:[#allocation5 + $0x8] sm:$0xff]  ;;  %vm59_vm0 = vcmask 785408   ;;  %v1127_v20 = vmov 0.0  }
  0x27   :  { %v49_v2 = vld [vmem:[#allocation5 + $0x10] sm:$0xff]  ;;  %v994_v3 = vpack.c.bf16 %v48_v1, %v47_v0  ;;  %v50_v4 = vld [vmem:[#allocation5 + $0x18] sm:$0xff]  ;;  %v51_v6 = vld [vmem:[#allocation5 + $0x20] sm:$0xff]  ;;  %954 = vmatprep.subr.mxu1 %v1127_v20  ;;  %vm1128_vm1 = vmmov 0   ;;  %s1129_s1 = smov 112   ;;  %s1130_s10 = smov 96  }
  0x28   :  { %v998_v5 = vpack.c.bf16 %v50_v4, %v49_v2  ;;  %v52_v7 = vld [vmem:[#allocation5 + $0x28] sm:$0xff]  ;;  %v1186_v8 = vld [vmem:[#allocation2] sm:$0xff]  ;;  %v54_v11 = vld [vmem:[#allocation5 + $0x38] sm:$0xff]  ;;  %956 = vmatprep.mubr.msk.f32.mxu1 %vm1128_vm1, %v1127_v20  ;;  %s1131_s11 = smov 80   ;;  %vm144_vm2 = vcmask 130048   ;;  %vm219_vm3 = vcmask 64512  }
  0x29   :  { %995 = vmatprep.subr.bf16.mxu0 %v994_v3  ;;  %v1002_v9 = vpack.c.bf16 %v52_v7, %v51_v6  ;;  %951 = vmatprep.mubr.msk.f32.mxu0 %vm59_vm0, %v1186_v8  ;;  %v53_v10 = vld [vmem:[#allocation5 + $0x30] sm:$0xff]  ;;  %v55_v13 = vld [vmem:[#allocation5 + $0x40] sm:$0xff]  ;;  %v56_v14 = vld [vmem:[#allocation5 + $0x48] sm:$0xff]  ;;  %s1132_s12 = smov 64   ;;  %s1133_s13 = smov 32   ;;  %vm483_vm4 = vcmask 261120  }
  0x2a   :  { %997 = vmatpush3.bf16.msra.mxu0 %v994_v3  ;;  %v1006_v12 = vpack.c.bf16 %v54_v11, %v53_v10  ;;  %v1010_v15 = vpack.c.bf16 %v56_v14, %v55_v13  ;;  %v57_v16 = vld [vmem:[#allocation5 + $0x50] sm:$0xff]  ;;  %v58_v17 = vld [vmem:[#allocation5 + $0x58] sm:$0xff]  ;;  %s1134_s14 = smov 40   ;;  %vm235_vm5 = vcmask 326912   ;;  %vm330_vm6 = vcmask 392512   ;;  %s1135_s19 = smov [#allocation7]  }
  0x2b   :  { %999 = vmatprep.subr.bf16.mxu0 %v998_v5  ;;  %v1014_v18 = vpack.c.bf16 %v58_v17, %v57_v16  ;;  %v1190_v19 = vld [vmem:[#allocation2 + $0x8] sm:$0xff]  ;;  %s868_s20 = sshll.u32 %s1135_s19, 4  ;;  %s869_s20 = int_to_ptr.vmem [resolvable:$true] %s868_s20 }
  0x2c   :  { %s1095_s21 = scalar_lea.vmem %s869_s20, 256  ;;  %p1100_p3 = scmp.lt.s32.totalorder %s869_s20, %s869_s20 }
  0x2d   :  { %p1096_p2 = scmp.ne.s32.totalorder %s869_s20, %s1095_s21  ;;  %p1101_p4 = scmp.lt.s32.totalorder %s1095_s21, %s1095_s21 }
  0x2e   :  { %1001 = vmatpush3.bf16.msra.mxu0 %v998_v5 }
  0x2f   :  { %1003 = vmatprep.subr.bf16.mxu0 %v1002_v9  ;;  %p1102_p5 = por %p1101_p4, %p1100_p3 }
  0x31   :  { %p1103_p6 = pnand %p1102_p5, %p1096_p2 }
  0x32   :  { %1005 = vmatpush3.bf16.msra.mxu0 %v1002_v9 }
  0x33   :  { %1007 = vmatprep.subr.bf16.mxu0 %v1006_v12 }
  0x36   :  { %1009 = vmatpush3.bf16.msra.mxu0 %v1006_v12 }
  0x37   :  { %1011 = vmatprep.subr.bf16.mxu0 %v1010_v15 }
  0x3a   :  { %1013 = vmatpush3.bf16.msra.mxu0 %v1010_v15 }
  0x3b   :  { %1015 = vmatprep.subr.bf16.mxu0 %v1014_v18 }
  0x3e   :  { %1017 = vmatpush3.bf16.msra.mxu0 %v1014_v18 }
  0x3f   :  { %984 = vmatprep.subr.mxu0 %v1127_v20 }
  0x41   :  { %952 = vmatmul.mubr.msk.f32.vlgmr.msra.gmra.mrb[0].mxu0 %vm59_vm0, %v1190_v19 }
  0x42   :  { %986 = vmatprep.mubr.msk.f32.mxu0 %vm1128_vm1, %v1127_v20 }
 0x114   :  { %v1200_v21 = vpop.f32.mrb[0].mxu0 }
 0x115   :  { %v132_v22 = vpop.f32.mrb[1].mxu0 }
 0x116   :  { %237 = vrot.lane.b32.xlu1 %v132_v22, %s1129_s1  ;;  %142 = vrot.lane.b32.xlu0 %v132_v22, %s1130_s10 }
 0x11a   :  { %239 = vrot.lane.b32.xlu0 %v132_v22, %s1131_s11 }
 0x188   :  { %v143_v23 = vpop.permute.xlu0 %142  ;;  %v238_v25 = vpop.permute.xlu1 %237 }
 0x189   :  { %955 = vmatpush3.xpose.msk.msra.mxu1 %vm144_vm2, %v143_v23 }
 0x18a   :  { %959 = vmatprep.subr.mxu1 %v1127_v20 }
 0x18c   :  { %957 = vmatmul.mubr.msk.f32.vlgmr.msra.gmra.mrb[0].mxu1 %vm144_vm2, %v132_v22  ;;  %v240_v24 = vpop.permute.xlu0 %239 }
 0x18d   :  { %960 = vmatpush3.xpose.msk.msra.mxu1 %vm144_vm2, %v240_v24  ;;  %961 = vmatprep.mubr.msk.f32.mxu1 %vm1128_vm1, %v1127_v20 }
 0x18e   :  { %964 = vmatprep.subr.mxu1 %v1127_v20 }
 0x190   :  { %962 = vmatmul.mubr.msk.f32.vlgmr.msra.gmra.mrb[2].mxu1 %vm144_vm2, %v238_v25 }
 0x191   :  { %966 = vmatprep.mubr.msk.f32.mxu1 %vm1128_vm1, %v1127_v20 }
 0x25f   :  { %v215_v26 = vpop.f32.mrb[0].mxu1 }
 0x260   :  { %v958_v27 = vpop.f32.mrb[1].mxu1  ;;  %v220_v28 = vsel %vm219_vm3, %v215_v26, -inf }
 0x261   :  { %221 = vmax.xlane.f32.xlu0 %v220_v28 }
 0x263   :  { %v311_v29 = vpop.f32.mrb[2].mxu1 }
 0x264   :  { %v963_v30 = vpop.f32.mrb[3].mxu1  ;;  %v315_v31 = vsel %vm219_vm3, %v311_v29, -inf }
 0x265   :  { %316 = vmax.xlane.f32.xlu1 %v315_v31 }
 0x2ee   :  { %v222_v32 = vpop.xlane.xlu0 %221 }
 0x2ef   :  { %v223_v33 = vsub.f32 %v215_v26, %v222_v32 }
 0x2f1   :  { %v224_v34 = vmul.f32 1.442695, %v223_v33 }
 0x2f2   :  { %v317_v35 = vpop.xlane.xlu1 %316 }
 0x2f3   :  { %1031 = vpow2.f32 %v224_v34  ;;  %v318_v36 = vsub.f32 %v311_v29, %v317_v35 }
 0x2f5   :  { %v319_v37 = vmul.f32 1.442695, %v318_v36 }
 0x2f7   :  { %1033 = vpow2.f32 %v319_v37 }
 0x2fd   :  { %v1032_v38 = vpop.eup %1031 }
 0x2fe   :  { %v226_v39 = vsel %vm219_vm3, %v1032_v38, 0.0 }
 0x2ff   :  { %227 = vadd.xlane.f32.xlu1 %v226_v39 }
 0x301   :  { %v1034_v40 = vpop.eup %1033 }
 0x302   :  { %v321_v41 = vsel %vm219_vm3, %v1034_v40, 0.0 }
 0x303   :  { %322 = vadd.xlane.f32.xlu0 %v321_v41 }
 0x310   :  { %407 = vrot.lane.b32.xlu1 %v132_v22, %s1132_s12 }
 0x314   :  { %510 = vrot.lane.b32.xlu1 %v1200_v21, %s1130_s10 }
 0x318   :  { %602 = vrot.lane.b32.xlu1 %v1200_v21, %s1129_s1 }
 0x319   :  { %332 = vrot.lane.b32.xlu0 %v132_v22, %s1133_s13 }
 0x31d   :  { %604 = vrot.lane.b32.xlu0 %v1200_v21, %s1131_s11 }
 0x38c   :  { %v228_v42 = vpop.xlane.xlu1 %227 }
 0x390   :  { %v323_v43 = vpop.xlane.xlu0 %322  ;;  %v408_v48 = vpop.permute.xlu1 %407 }
 0x391   :  { %1035 = vrcp.f32 %v323_v43 }
 0x392   :  { %1037 = vrcp.f32 %v228_v42 }
 0x394   :  { %v333_v44 = vpop.permute.xlu0 %332  ;;  %v511_v50 = vpop.permute.xlu1 %510 }
 0x395   :  { %965 = vmatpush3.msra.mxu1 %v333_v44 }
 0x396   :  { %969 = vmatprep.subr.mxu1 %v1127_v20 }
 0x398   :  { %v605_v51 = vpop.permute.xlu0 %604  ;;  %v603_v52 = vpop.permute.xlu1 %602 }
 0x39b   :  { %v1036_v45 = vpop.eup %1035 }
 0x39c   :  { %v1228_v46 = vmul.f32 %v1036_v45, %v1034_v40  ;;  %v1038_v47 = vpop.eup %1037 }
 0x39d   :  { %v230_v49 = vmul.f32 %v1038_v47, %v1032_v38 }
 0x39e   :  { %967 = vmatmul.mubr.msk.f32.vlgmr.msra.gmra.mrb[4].mxu1 %vm219_vm3, %v1228_v46 }
 0x39f   :  { %970 = vmatpush3.msra.mxu1 %v408_v48  ;;  %971 = vmatprep.mubr.msk.f32.mxu1 %vm1128_vm1, %v1127_v20 }
 0x3a0   :  { %974 = vmatprep.subr.mxu1 %v1127_v20 }
 0x3a2   :  { %972 = vmatmul.mubr.msk.f32.vlgmr.msra.gmra.mrb[6].mxu1 %vm219_vm3, %v230_v49 }
 0x3a3   :  { %976 = vmatprep.mubr.msk.f32.mxu1 %vm1128_vm1, %v1127_v20 }
 0x3a6   :  { %975 = vmatpush3.xpose.msk.msra.mxu1 %vm144_vm2, %v511_v50  ;;  %v890_v50 = vld [vmem:[%s1295_s2 + $0x1] ss:$0 sm:$0xff] }
 0x3a7   :  { %979 = vmatprep.subr.mxu1 %v1127_v20 }
 0x3a9   :  { %977 = vmatmul.mubr.msk.f32.vlgmr.msra.gmra.mrb[8].mxu1 %vm144_vm2, %v1200_v21 }
 0x3aa   :  { %980 = vmatpush3.xpose.msk.msra.mxu1 %vm144_vm2, %v605_v51  ;;  %981 = vmatprep.mubr.msk.f32.mxu1 %vm1128_vm1, %v1127_v20 }
 0x3ab   :  { %989 = vmatprep.subr.mxu1 %v1127_v20 }
 0x3ad   :  { %982 = vmatmul.mubr.msk.f32.vlgmr.msra.gmra.mrb[10].mxu1 %vm144_vm2, %v603_v52 }
 0x3ae   :  { %991 = vmatprep.mubr.msk.f32.mxu1 %vm1128_vm1, %v1127_v20 }
 0x471   :  { %v403_v53 = vpop.f32.mrb[4].mxu1 }
 0x472   :  { %v968_v54 = vpop.f32.mrb[5].mxu1 }
 0x475   :  { %v478_v55 = vpop.f32.mrb[6].mxu1 }
 0x476   :  { %v479_v56 = vadd.f32 %v478_v55, %v403_v53  ;;  %v973_v57 = vpop.f32.mrb[7].mxu1 }
 0x478   :  { %v482_v0 = vadd.f32 %v479_v56, %v1186_v8 }
 0x47a   :  { %v484_v1 = vsel %vm483_vm4, %v482_v0, 0.0 }
 0x47c   :  { %v582_v58 = vpop.f32.mrb[8].mxu1 }
 0x47d   :  { %v978_v59 = vpop.f32.mrb[9].mxu1  ;;  %v586_v60 = vsel %vm219_vm3, %v582_v58, -inf }
 0x47e   :  { %587 = vmax.xlane.f32.xlu0 %v586_v60 }
 0x480   :  { %v676_v61 = vpop.f32.mrb[10].mxu1 }
 0x481   :  { %v983_v62 = vpop.f32.mrb[11].mxu1  ;;  %v680_v63 = vsel %vm219_vm3, %v676_v61, -inf }
 0x482   :  { %681 = vmax.xlane.f32.xlu1 %v680_v63 }
 0x493   :  { %696 = vrot.lane.b32.xlu1 %v1200_v21, %s1133_s13 }
 0x4b7   :  { %485 = vadd.xlane.f32.xlu1 %v484_v1 }
 0x50b   :  { %v588_v2 = vpop.xlane.xlu0 %587 }
 0x50c   :  { %v589_v3 = vsub.f32 %v582_v58, %v588_v2 }
 0x50e   :  { %v590_v4 = vmul.f32 1.442695, %v589_v3 }
 0x50f   :  { %v682_v5 = vpop.xlane.xlu1 %681 }
 0x510   :  { %1039 = vpow2.f32 %v590_v4  ;;  %v683_v6 = vsub.f32 %v676_v61, %v682_v5 }
 0x512   :  { %v684_v7 = vmul.f32 1.442695, %v683_v6 }
 0x513   :  { %v697_v9 = vpop.permute.xlu1 %696 }
 0x514   :  { %1041 = vpow2.f32 %v684_v7  ;;  %985 = vmatpush3.msra.mxu0 %v697_v9 }
 0x51a   :  { %v1040_v10 = vpop.eup %1039 }
 0x51b   :  { %v592_v11 = vsel %vm219_vm3, %v1040_v10, 0.0 }
 0x51c   :  { %593 = vadd.xlane.f32.xlu0 %v592_v11 }
 0x51e   :  { %v1042_v12 = vpop.eup %1041 }
 0x51f   :  { %v686_v8 = vsel %vm219_vm3, %v1042_v12, 0.0 }
 0x520   :  { %687 = vadd.xlane.f32.xlu0 %v686_v8 }
 0x536   :  { %771 = vrot.lane.b32.xlu0 %v1200_v21, %s1132_s12 }
 0x544   :  { %v486_v13 = vpop.xlane.xlu1 %485 }
 0x545   :  { %v488_v14 = vmul.f32 0.03125, %v486_v13 }
 0x547   :  { %v489_v15 = vsub.f32 %v482_v0, %v488_v14 }
 0x549   :  { %v490_v16 = vmul.f32 %v489_v15, %v489_v15 }
 0x54b   :  { %v491_v17 = vsel %vm483_vm4, %v490_v16, 0.0 }
 0x54c   :  { %492 = vadd.xlane.f32.xlu1 %v491_v17 }
 0x55d   :  { %232 = vrot.lane.b32.xlu1 %v230_v49, %s1133_s13 }
 0x5a9   :  { %v594_v18 = vpop.xlane.xlu0 %593 }
 0x5aa   :  { %1043 = vrcp.f32 %v594_v18 }
 0x5ad   :  { %v688_v20 = vpop.xlane.xlu0 %687 }
 0x5ae   :  { %1045 = vrcp.f32 %v688_v20 }
 0x5b1   :  { %v772_v22 = vpop.permute.xlu0 %771 }
 0x5b2   :  { %990 = vmatpush3.msra.mxu1 %v772_v22 }
 0x5b4   :  { %v1044_v23 = vpop.eup %1043 }
 0x5b5   :  { %v596_v24 = vmul.f32 %v1044_v23, %v1040_v10 }
 0x5b7   :  { %598 = vrot.lane.b32.xlu1 %v596_v24, %s1133_s13  ;;  %992 = vmatmul.mubr.msk.f32.vlgmr.msra.gmra.mrb[12].mxu1 %vm219_vm3, %v596_v24 }
 0x5b8   :  { %v1046_v21 = vpop.eup %1045 }
 0x5b9   :  { %v690_v25 = vmul.f32 %v1046_v21, %v1042_v12 }
 0x5bb   :  { %692 = vrot.lane.b32.xlu1 %v690_v25, %s1134_s14  ;;  %987 = vmatmul.mubr.msk.f32.vlgmr.msra.gmra.mrb[2].mxu0 %vm219_vm3, %v690_v25 }
 0x5d9   :  { %v493_v26 = vpop.xlane.xlu1 %492 }
 0x5da   :  { %v494_v42 = vmul.f32 0.03125, %v493_v26 }
 0x5dc   :  { %v495_v43 = vadd.f32 1e-06, %v494_v42 }
 0x5dd   :  { %v233_v27 = vpop.permute.xlu1 %232 }
 0x5de   :  { %236 = vst.msk [vmem:[#allocation7] sm:$0xff] %vm235_vm5, %v233_v27  ;;  %1047 = vrsqrt.f32 %v495_v43 }
 0x5e8   :  { %v1048_v44 = vpop.eup %1047 }
 0x5e9   :  { %v497_v45 = vmul.f32 %v1048_v44, %v489_v15 }
 0x629   :  { %v599_v28 = vpop.permute.xlu1 %598 }
 0x62a   :  { %601 = vst.msk [vmem:[#allocation7 + $0x8] sm:$0xff] %vm235_vm5, %v599_v28 }
 0x62d   :  { %v693_v29 = vpop.permute.xlu1 %692 }
 0x62e   :  { %695 = vst.msk [vmem:[#allocation7 + $0x8] sm:$0xff] %vm330_vm6, %v693_v29 }
 0x68a   :  { %v842_v30 = vpop.f32.mrb[12].mxu1 }
 0x68b   :  { %v993_v31 = vpop.f32.mrb[13].mxu1 }
 0x68e   :  { %v767_v32 = vpop.f32.mrb[2].mxu0 }
 0x68f   :  { %v843_v33 = vadd.f32 %v842_v30, %v767_v32  ;;  %v988_v34 = vpop.f32.mrb[3].mxu0 }
 0x691   :  { %v846_v35 = vadd.f32 %v843_v33, %v1190_v19  ;;  %v889_v19 = vld [vmem:[%s1295_s2] ss:$0 sm:$0xff] }
 0x692   :  { %v502_v48 = vmul.f32 %v889_v19, %v497_v45 }
 0x693   :  { %v847_v36 = vsel %vm483_vm4, %v846_v35, 0.0 }
 0x694   :  { %848 = vadd.xlane.f32.xlu0 %v847_v36  ;;  %v507_v53 = vadd.f32 %v890_v50, %v502_v48 }
 0x721   :  { %v849_v37 = vpop.xlane.xlu0 %848 }
 0x722   :  { %v850_v38 = vmul.f32 0.03125, %v849_v37 }
 0x724   :  { %v851_v39 = vsub.f32 %v846_v35, %v850_v38 }
 0x726   :  { %v852_v40 = vmul.f32 %v851_v39, %v851_v39 }
 0x728   :  { %v853_v41 = vsel %vm483_vm4, %v852_v40, 0.0 }
 0x729   :  { %854 = vadd.xlane.f32.xlu0 %v853_v41 }
 0x73f   :  { %327 = vrot.lane.b32.xlu0 %v1228_v46, %s1134_s14 }
 0x7b6   :  { %v855_v47 = vpop.xlane.xlu0 %854 }
 0x7b7   :  { %v856_v49 = vmul.f32 0.03125, %v855_v47 }
 0x7b9   :  { %v857_v51 = vadd.f32 1e-06, %v856_v49 }
 0x7ba   :  { %v328_v52 = vpop.permute.xlu0 %327 }
 0x7bb   :  { %1049 = vrsqrt.f32 %v857_v51  ;;  %331 = vst.msk [vmem:[#allocation7] sm:$0xff] %vm330_vm6, %v328_v52 }
 0x7bc   :  { %508 = vst.msk [vmem:[#allocation7] sm:$0xff] %vm483_vm4, %v507_v53 }
 0x7c5   :  { %v1050_v46 = vpop.eup %1049 }
 0x7c6   :  { %v859_v54 = vmul.f32 %v1050_v46, %v851_v39 }
 0x7c8   :  { %v860_v55 = vmul.f32 %v889_v19, %v859_v54 }
 0x7ca   :  { %v861_v56 = vadd.f32 %v890_v50, %v860_v55 }
 0x7cc   :  { %862 = vst.msk [vmem:[#allocation7 + $0x8] sm:$0xff] %vm483_vm4, %v861_v56 }
 0x7cd   :  { %1106 = shalt.err (!%p1103_p6)
}
 0x7ce   :  { %s1107_s25 = scalar_lea.hbm %s1296_s3, 256 }
 0x7cf   :  { %p1108_p7 = scmp.ne.s32.totalorder %s1296_s3, %s1107_s25  ;;  %p1111_p8 = scmp.lt.u32.totalorder %s1107_s25, %s1296_s3 }
 0x7d1   :  { %p1113_p9 = pnand %p1111_p8, %p1108_p7 }
 0x7d3   :  { %1116 = shalt.err (!%p1113_p9)
}
 0x7d4   :  { %874 = dma.vmem_to_hbm [thread:$0]  %s869_s20, 256, %s1296_s3, [#allocation4], %s1124_s22, %s1124_s22, %s1125_s23  }
 0x7d5   :  { %1121 = dma.done.wait [#allocation4], 256  }
 0x7d6   :  { %1122 = vsyncadd [#allocation4], 4294967040 }
 0x7d7   :  { %878 = vsyncpa [#allocation3], 1 }
 0x7d8   :  { %879 = vsyncpa [#allocation6], 1 }
 0x7d9   :  { %880 = vsyncpa [#allocation4], 1 }

</bundles_post_ra>
